<compile_context>
chip_gen: v6e
topology: v6e:2x2x1
jax: 0.10.0
libtpu: 0.0.40
codegen_flags: <defaults>
</compile_context>

<pallas_src>
import functools

import jax
import jax.numpy as jnp
from jax import lax
from jax.experimental import pallas as pl
from jax.experimental.pallas import tpu as pltpu


C_IN = 3              # RGB input, as inception_v3 expects
STEM_OC = 32          # inception_v3 Conv2d_1a_3x3 output channels
BACKBONE_OUT = 1000   # timm inception_v3 default head width
NUM_OUT = 3           # nn.Linear(1000, 3)
KH = KW = 3
STRIDE = 2


def _round_up(x, m):
    return (x + m - 1) // m * m


# -----------------------------------------------------------------------------
# Fused kernel: one grid step per image.
#   phases_ref : (1, 12, L_pad) bf16   rows = (phase_h*2 + phase_w)*3 + channel,
#                                      lanes = flattened (i*Wh + j) phase coords
#   w_ref      : (4, OC, 12)    bf16   per-shift-group conv weights (zeros where
#                                      a (phase, channel) row does not apply)
#   b_ref      : (OC, 1)        f32    conv bias
#   m_ref      : (1, M)         f32    valid-output-position mask (0/1)
#   hw_ref     : (NO, OC)       f32    collapsed head weights, pre-scaled by 1/S
#   hb_ref     : (NO, 1)        f32    collapsed head bias
#   o_ref      : (1, NO, 1)     f32    logits for this image
# -----------------------------------------------------------------------------
def _fused_stem_pool_head_kernel(phases_ref, w_ref, b_ref, m_ref, hw_ref,
                                 hb_ref, o_ref, *, wh, m_len):
    # The 3x3/stride-2 conv decomposes into 4 shift groups over the phase
    # planes; each group is one MXU matmul (bf16 operands, f32 accumulate)
    # against a lane-shifted view of the resident image.  Taps are built here,
    # in VMEM, so HBM only ever sees the image once.
    shifts = (0, 1, wh, wh + 1)
    preact = None
    for g, s in enumerate(shifts):
        slab = phases_ref[0, :, pl.ds(s, m_len)]               # (12, M) bf16
        part = jnp.dot(w_ref[g], slab,
                       preferred_element_type=jnp.float32)     # (OC, M) f32
        preact = part if preact is None else preact + part

    acts = jnp.maximum(preact + b_ref[...], 0.0)               # bias + ReLU
    acts = acts * m_ref[...]                                   # drop invalid cols

    # Global average pool: masked spatial sum (1/S is folded into hw_ref).
    pooled = jnp.sum(acts, axis=-1, keepdims=True)             # (OC, 1) f32

    # Collapsed fc(1000) @ classifier(3) head.
    logits = jnp.dot(hw_ref[...], pooled,
                     preferred_element_type=jnp.float32) + hb_ref[...]
    o_ref[0] = logits.astype(o_ref.dtype)                      # (NO, 1)


def fused_stem_pool_head(x_nchw, conv_w, conv_b, head_w, head_b):
    """x_nchw (N,C,H,W) f32; conv_w (3,3,C,OC); conv_b (OC,); head_w (OC,NO);
    head_b (NO,)  ->  logits (N, NO) f32."""
    N, C, H, W = x_nchw.shape
    OC = conv_w.shape[3]
    NO = head_w.shape[1]
    OH = (H - KH) // STRIDE + 1
    OW = (W - KW) // STRIDE + 1
    S = OH * OW                       # valid output positions (pool count)
    Hh = -(-H // 2)                   # ceil(H/2): phase-plane height
    Wh = -(-W // 2)                   # ceil(W/2): phase-plane width
    L = Hh * Wh
    L_pad = _round_up(L + 1, 128)     # lane-dense, room for the (Wh+1) shift
    M = OH * Wh                       # computed positions (one junk col / row)

    # --- 1. bf16 FIRST, then the stride-2 phase split (moves |x| bf16 once;
    #        replaces the old f32 im2col that expanded HBM traffic ~2.25x). ---
    xb = x_nchw.astype(jnp.bfloat16)
    xb = jnp.pad(xb, ((0, 0), (0, 0), (0, 2 * Hh - H), (0, 2 * Wh - W)))
    xb = xb.reshape(N, C, Hh, 2, Wh, 2).transpose(0, 3, 5, 1, 2, 4)
    phases = xb.reshape(N, 4 * C, L)                       # row = (ph*2+pw)*C + c
    phases = jnp.pad(phases, ((0, 0), (0, 0), (0, L_pad - L)))

    # --- 2. Per-shift-group conv weights.  Tap (kh,kw) lives in shift group
    #        g = (kh//2)*2 + kw//2 (lane shift g -> {0,1,Wh,Wh+1}) and phase
    #        p = (kh%2)*2 + kw%2; unused (phase,channel) rows stay zero. ---
    wg = jnp.zeros((4, OC, 4 * C), jnp.float32)
    for kh in range(KH):
        for kw in range(KW):
            g = (kh // 2) * 2 + (kw // 2)
            p = (kh % 2) * 2 + (kw % 2)
            wg = wg.at[g, :, p * C:(p + 1) * C].set(conv_w[kh, kw].T)
    wg = wg.astype(jnp.bfloat16)

    # --- 3. Valid-position mask: column j = pos % Wh must be a real output. ---
    pos = jnp.arange(M, dtype=jnp.int32)
    mask = ((pos % Wh) < OW).astype(jnp.float32).reshape(1, M)

    # --- 4. Fold 1/S (pool mean) into the collapsed head weights. ---
    hw_t = (head_w.T / float(S)).astype(jnp.float32)       # (NO, OC)
    hb_t = head_b.reshape(NO, 1).astype(jnp.float32)       # (NO, 1)
    b_col = conv_b.reshape(OC, 1).astype(jnp.float32)      # (OC, 1)

    kernel = functools.partial(_fused_stem_pool_head_kernel, wh=Wh, m_len=M)

    out = pl.pallas_call(
        kernel,
        out_shape=jax.ShapeDtypeStruct((N, NO, 1), jnp.float32),
        grid=(N,),                                         # whole image / step
        in_specs=[
            pl.BlockSpec((1, 4 * C, L_pad), lambda n: (n, 0, 0)),  # phase planes
            pl.BlockSpec((4, OC, 4 * C), lambda n: (0, 0, 0)),     # conv weights
            pl.BlockSpec((OC, 1), lambda n: (0, 0)),               # conv bias
            pl.BlockSpec((1, M), lambda n: (0, 0)),                # valid mask
            pl.BlockSpec((NO, OC), lambda n: (0, 0)),              # head W / S
            pl.BlockSpec((NO, 1), lambda n: (0, 0)),               # head bias
        ],
        out_specs=pl.BlockSpec((1, NO, 1), lambda n: (n, 0, 0)),
        compiler_params=pltpu.CompilerParams(
            dimension_semantics=("parallel",)),            # megacore over batch
    )(phases, wg, b_col, mask, hw_t, hb_t)
    return out.reshape(N, NO)


# -----------------------------------------------------------------------------
# Parameters + forward
# -----------------------------------------------------------------------------
def init_params(key):
    k = jax.random.split(key, 6)
    s = 0.05
    return {
        "conv_w": s * jax.random.normal(k[0], (KH, KW, C_IN, STEM_OC), jnp.float32),
        "conv_b": s * jax.random.normal(k[1], (STEM_OC,), jnp.float32),
        "fc_w":   s * jax.random.normal(k[2], (STEM_OC, BACKBONE_OUT), jnp.float32),
        "fc_b":   s * jax.random.normal(k[3], (BACKBONE_OUT,), jnp.float32),
        "cls_w":  s * jax.random.normal(k[4], (BACKBONE_OUT, NUM_OUT), jnp.float32),
        "cls_b":  s * jax.random.normal(k[5], (NUM_OUT,), jnp.float32),
    }


@jax.jit
def mask_model_forward(x_nchw, params):
    # Exact algebraic collapse of fc(->1000) followed by classifier(1000->3):
    # valid because no nonlinearity sits between the two linears.
    head_w = params["fc_w"] @ params["cls_w"]                     # (OC, 3)
    head_b = params["fc_b"] @ params["cls_w"] + params["cls_b"]   # (3,)
    return fused_stem_pool_head(x_nchw.astype(jnp.float32),
                                params["conv_w"], params["conv_b"],
                                head_w, head_b)


def _reference_forward(x_nchw, params):
    """Pure-jnp reference using the same bf16-rounded conv operands."""
    xb = x_nchw.astype(jnp.bfloat16).astype(jnp.float32)
    wb = params["conv_w"].astype(jnp.bfloat16).astype(jnp.float32)
    w_oihw = jnp.transpose(wb, (3, 2, 0, 1))                      # (OC, C, 3, 3)
    conv = lax.conv_general_dilated(
        xb, w_oihw, window_strides=(STRIDE, STRIDE), padding="VALID",
        dimension_numbers=("NCHW", "OIHW", "NCHW"))
    acts = jnp.maximum(conv + params["conv_b"].reshape(1, -1, 1, 1), 0.0)
    pooled = acts.mean(axis=(2, 3))                               # (N, OC)
    head_w = params["fc_w"] @ params["cls_w"]
    head_b = params["fc_b"] @ params["cls_w"] + params["cls_b"]
    return pooled @ head_w + head_b


if __name__ == "__main__":
    key = jax.random.PRNGKey(0)
    k_x, k_p = jax.random.split(key)
    # small shapes: batch=2, channels=3 (RGB, as inception expects), spatial=16
    x = jax.random.normal(k_x, (2, C_IN, 16, 16), jnp.float32)
    params = init_params(k_p)

    out = jax.block_until_ready(mask_model_forward(x, params))
    assert out.shape == (2, NUM_OUT) and out.dtype == jnp.float32
    assert bool(jnp.all(jnp.isfinite(out)))

    # Correctness vs. a pure-jnp reference built from the same bf16-rounded
    # operands (only accumulation order differs -> tight agreement expected).
    ref = _reference_forward(x, params)
    assert bool(jnp.allclose(out, ref, rtol=2e-2, atol=2e-2)), (out, ref)

    print("KERNEL_OK")
</pallas_src>

<mosaic_0001>
module attributes {stable_mosaic.version = 11 : i64} {
  func.func @_fused_stem_pool_head_kernel(%arg0: i32, %arg1: memref<1x12x128xbf16, #tpu.memory_space<vmem>>, %arg2: memref<4x32x12xbf16, #tpu.memory_space<vmem>>, %arg3: memref<32x1xf32, #tpu.memory_space<vmem>>, %arg4: memref<1x56xf32, #tpu.memory_space<vmem>>, %arg5: memref<3x32xf32, #tpu.memory_space<vmem>>, %arg6: memref<3x1xf32, #tpu.memory_space<vmem>>, %arg7: memref<1x3x1xf32, #tpu.memory_space<vmem>>) attributes {dimension_semantics = [#tpu.dimension_semantics<parallel>], iteration_bounds = array<i64: 2>, scalar_prefetch = 0 : i64, scratch_operands = 0 : i64, tpu.core_type = #tpu.core_type<tc>, window_params = [{transform_indices = @transform_0, window_bounds = array<i64: 1, 12, 128>}, {pipeline_mode = #tpu.pipeline_mode<synchronous>, transform_indices = @transform_1, window_bounds = array<i64: 4, 32, 12>}, {pipeline_mode = #tpu.pipeline_mode<synchronous>, transform_indices = @transform_2, window_bounds = array<i64: 32, 1>}, {pipeline_mode = #tpu.pipeline_mode<synchronous>, transform_indices = @transform_3, window_bounds = array<i64: 1, 56>}, {pipeline_mode = #tpu.pipeline_mode<synchronous>, transform_indices = @transform_4, window_bounds = array<i64: 3, 32>}, {pipeline_mode = #tpu.pipeline_mode<synchronous>, transform_indices = @transform_5, window_bounds = array<i64: 3, 1>}, {transform_indices = @transform_6, window_bounds = array<i64: 1, 3, 1>}]} {
    %c0 = arith.constant 0 : index
    %c0_0 = arith.constant 0 : index
    %c0_1 = arith.constant 0 : index
    %0 = vector.load %arg1[%c0, %c0_0, %c0_1] : memref<1x12x128xbf16, #tpu.memory_space<vmem>>, vector<1x12x56xbf16>
    %1 = vector.shape_cast %0 : vector<1x12x56xbf16> to vector<12x56xbf16>
    %c0_2 = arith.constant 0 : index
    %c0_3 = arith.constant 0 : index
    %c0_4 = arith.constant 0 : index
    %2 = vector.load %arg2[%c0_2, %c0_3, %c0_4] : memref<4x32x12xbf16, #tpu.memory_space<vmem>>, vector<1x32x12xbf16>
    %3 = vector.shape_cast %2 : vector<1x32x12xbf16> to vector<32x12xbf16>
    %cst = arith.constant dense<0.000000e+00> : vector<32x56xf32>
    %4 = tpu.matmul %3, %1, %cst {dimension_numbers = #tpu.dot_dimension_numbers<[1], [0], [0], [1], [0, 0, 1, 1], [], []>} : vector<32x12xbf16>, vector<12x56xbf16>, vector<32x56xf32> -> vector<32x56xf32>
    %c0_5 = arith.constant 0 : index
    %c0_6 = arith.constant 0 : index
    %c1 = arith.constant 1 : index
    %5 = vector.load %arg1[%c0_5, %c0_6, %c1] : memref<1x12x128xbf16, #tpu.memory_space<vmem>>, vector<1x12x56xbf16>
    %6 = vector.shape_cast %5 : vector<1x12x56xbf16> to vector<12x56xbf16>
    %c1_7 = arith.constant 1 : index
    %c0_8 = arith.constant 0 : index
    %c0_9 = arith.constant 0 : index
    %7 = vector.load %arg2[%c1_7, %c0_8, %c0_9] : memref<4x32x12xbf16, #tpu.memory_space<vmem>>, vector<1x32x12xbf16>
    %8 = vector.shape_cast %7 : vector<1x32x12xbf16> to vector<32x12xbf16>
    %cst_10 = arith.constant dense<0.000000e+00> : vector<32x56xf32>
    %9 = tpu.matmul %8, %6, %cst_10 {dimension_numbers = #tpu.dot_dimension_numbers<[1], [0], [0], [1], [0, 0, 1, 1], [], []>} : vector<32x12xbf16>, vector<12x56xbf16>, vector<32x56xf32> -> vector<32x56xf32>
    %10 = arith.addf %4, %9 : vector<32x56xf32>
    %c0_11 = arith.constant 0 : index
    %c0_12 = arith.constant 0 : index
    %c8 = arith.constant 8 : index
    %11 = vector.load %arg1[%c0_11, %c0_12, %c8] : memref<1x12x128xbf16, #tpu.memory_space<vmem>>, vector<1x12x56xbf16>
    %12 = vector.shape_cast %11 : vector<1x12x56xbf16> to vector<12x56xbf16>
    %c2 = arith.constant 2 : index
    %c0_13 = arith.constant 0 : index
    %c0_14 = arith.constant 0 : index
    %13 = vector.load %arg2[%c2, %c0_13, %c0_14] : memref<4x32x12xbf16, #tpu.memory_space<vmem>>, vector<1x32x12xbf16>
    %14 = vector.shape_cast %13 : vector<1x32x12xbf16> to vector<32x12xbf16>
    %cst_15 = arith.constant dense<0.000000e+00> : vector<32x56xf32>
    %15 = tpu.matmul %14, %12, %cst_15 {dimension_numbers = #tpu.dot_dimension_numbers<[1], [0], [0], [1], [0, 0, 1, 1], [], []>} : vector<32x12xbf16>, vector<12x56xbf16>, vector<32x56xf32> -> vector<32x56xf32>
    %16 = arith.addf %10, %15 : vector<32x56xf32>
    %c0_16 = arith.constant 0 : index
    %c0_17 = arith.constant 0 : index
    %c9 = arith.constant 9 : index
    %17 = vector.load %arg1[%c0_16, %c0_17, %c9] : memref<1x12x128xbf16, #tpu.memory_space<vmem>>, vector<1x12x56xbf16>
    %18 = vector.shape_cast %17 : vector<1x12x56xbf16> to vector<12x56xbf16>
    %c3 = arith.constant 3 : index
    %c0_18 = arith.constant 0 : index
    %c0_19 = arith.constant 0 : index
    %19 = vector.load %arg2[%c3, %c0_18, %c0_19] : memref<4x32x12xbf16, #tpu.memory_space<vmem>>, vector<1x32x12xbf16>
    %20 = vector.shape_cast %19 : vector<1x32x12xbf16> to vector<32x12xbf16>
    %cst_20 = arith.constant dense<0.000000e+00> : vector<32x56xf32>
    %21 = tpu.matmul %20, %18, %cst_20 {dimension_numbers = #tpu.dot_dimension_numbers<[1], [0], [0], [1], [0, 0, 1, 1], [], []>} : vector<32x12xbf16>, vector<12x56xbf16>, vector<32x56xf32> -> vector<32x56xf32>
    %22 = arith.addf %16, %21 : vector<32x56xf32>
    %c0_21 = arith.constant 0 : index
    %c0_22 = arith.constant 0 : index
    %23 = vector.load %arg3[%c0_21, %c0_22] : memref<32x1xf32, #tpu.memory_space<vmem>>, vector<32x1xf32>
    %24 = vector.broadcast %23 : vector<32x1xf32> to vector<32x56xf32>
    %25 = arith.addf %22, %24 : vector<32x56xf32>
    %cst_23 = arith.constant 0.000000e+00 : f32
    %26 = vector.broadcast %cst_23 : f32 to vector<32x56xf32>
    %27 = arith.maximumf %25, %26 : vector<32x56xf32>
    %c0_24 = arith.constant 0 : index
    %c0_25 = arith.constant 0 : index
    %28 = vector.load %arg4[%c0_24, %c0_25] : memref<1x56xf32, #tpu.memory_space<vmem>>, vector<1x56xf32>
    %29 = vector.broadcast %28 : vector<1x56xf32> to vector<32x56xf32>
    %30 = arith.mulf %27, %29 : vector<32x56xf32>
    %cst_26 = arith.constant dense<0.000000e+00> : vector<32xf32>
    %31 = vector.multi_reduction <add>, %30, %cst_26 [1] : vector<32x56xf32> to vector<32xf32>
    %32 = vector.shape_cast %31 : vector<32xf32> to vector<32x1xf32>
    %c0_27 = arith.constant 0 : index
    %c0_28 = arith.constant 0 : index
    %33 = vector.load %arg5[%c0_27, %c0_28] : memref<3x32xf32, #tpu.memory_space<vmem>>, vector<3x32xf32>
    %cst_29 = arith.constant dense<0.000000e+00> : vector<3x1xf32>
    %34 = tpu.matmul %33, %32, %cst_29 {dimension_numbers = #tpu.dot_dimension_numbers<[1], [0], [0], [1], [0, 0, 1, 1], [], []>} : vector<3x32xf32>, vector<32x1xf32>, vector<3x1xf32> -> vector<3x1xf32>
    %c0_30 = arith.constant 0 : index
    %c0_31 = arith.constant 0 : index
    %35 = vector.load %arg6[%c0_30, %c0_31] : memref<3x1xf32, #tpu.memory_space<vmem>>, vector<3x1xf32>
    %36 = arith.addf %34, %35 : vector<3x1xf32>
    %c0_32 = arith.constant 0 : index
    %c0_33 = arith.constant 0 : index
    %c0_34 = arith.constant 0 : index
    %37 = vector.load %arg7[%c0_32, %c0_33, %c0_34] : memref<1x3x1xf32, #tpu.memory_space<vmem>>, vector<1x3x1xf32>
    %38 = vector.shape_cast %37 : vector<1x3x1xf32> to vector<3x1xf32>
    %39 = vector.shape_cast %36 : vector<3x1xf32> to vector<1x3x1xf32>
    tpu.vector_store %arg7[%c0_32, %c0_33, %c0_34], %39 {strides = array<i32>} : memref<1x3x1xf32, #tpu.memory_space<vmem>>, vector<1x3x1xf32>,
    return
  }
  func.func @transform_0(%arg0: i32) -> (i32, i32, i32) {
    %c0_i32 = arith.constant 0 : i32
    %c0_i32_0 = arith.constant 0 : i32
    %c0_i32_1 = arith.constant 0 : i32
    return %arg0, %c0_i32, %c0_i32_0 : i32, i32, i32
  }
  func.func @transform_1(%arg0: i32) -> (i32, i32, i32) {
    %c0_i32 = arith.constant 0 : i32
    %c0_i32_0 = arith.constant 0 : i32
    %c0_i32_1 = arith.constant 0 : i32
    %c0_i32_2 = arith.constant 0 : i32
    return %c0_i32, %c0_i32_0, %c0_i32_1 : i32, i32, i32
  }
  func.func @transform_2(%arg0: i32) -> (i32, i32) {
    %c0_i32 = arith.constant 0 : i32
    %c0_i32_0 = arith.constant 0 : i32
    %c0_i32_1 = arith.constant 0 : i32
    return %c0_i32, %c0_i32_0 : i32, i32
  }
  func.func @transform_3(%arg0: i32) -> (i32, i32) {
    %c0_i32 = arith.constant 0 : i32
    %c0_i32_0 = arith.constant 0 : i32
    %c0_i32_1 = arith.constant 0 : i32
    return %c0_i32, %c0_i32_0 : i32, i32
  }
  func.func @transform_4(%arg0: i32) -> (i32, i32) {
    %c0_i32 = arith.constant 0 : i32
    %c0_i32_0 = arith.constant 0 : i32
    %c0_i32_1 = arith.constant 0 : i32
    return %c0_i32, %c0_i32_0 : i32, i32
  }
  func.func @transform_5(%arg0: i32) -> (i32, i32) {
    %c0_i32 = arith.constant 0 : i32
    %c0_i32_0 = arith.constant 0 : i32
    %c0_i32_1 = arith.constant 0 : i32
    return %c0_i32, %c0_i32_0 : i32, i32
  }
  func.func @transform_6(%arg0: i32) -> (i32, i32, i32) {
    %c0_i32 = arith.constant 0 : i32
    %c0_i32_0 = arith.constant 0 : i32
    %c0_i32_1 = arith.constant 0 : i32
    return %arg0, %c0_i32, %c0_i32_0 : i32, i32, i32
  }
}

</mosaic_0001>

<bundles_post_ra>
// kernel: mask_model_forward.1
= control target key start
LH: loop header
LB: loop body
LE: loop exit
PB: predicated region body
PF: predicated region fallthrough
CT: control target
= control target key end

     0   :  { %s924_s21 = smov 0   ;;  %s1010_s0 = inlined_call_operand.vmem [shape: bf16[2,12,128], index: 0, kind: input, shape index: {}]   ;;  %s1011_s1 = inlined_call_operand.vmem [shape: bf16[4,32,12], index: 1, kind: input, shape index: {}]   ;;  %s1012_s2 = inlined_call_operand.vmem [shape: f32[32,1], index: 2, kind: input, shape index: {}]   ;;  %s1013_s3 = inlined_call_operand.vmem [shape: f32[1,56], index: 3, kind: input, shape index: {}]   ;;  %s1014_s4 = inlined_call_operand.vmem [shape: f32[3,32], index: 4, kind: input, shape index: {}]   ;;  %s1015_s5 = inlined_call_operand.vmem [shape: f32[3,1], index: 5, kind: input, shape index: {}]   ;;  %s1016_s6 = inlined_call_operand.vmem [shape: f32[2,3,1], index: 6, kind: output, shape index: {}]  }
   0x1 LB: > { %s752_s22 = sadd.s32 4294967295, %s881_s21   ;;  %p756_p0 = scmp.ge.s32.totalorder %s881_s21, 1  ;;  %s881_s21 = sphi %s924_s21, %s16_s21  }
   0x2   : > { %p212_p1 = scmp.lt.s32.totalorder %s881_s21, 3 }
   0x4   : > { %p213_p2 = pnand %p756_p0, %p212_p1 }
   0x5   : > { %p241_p3 = scmp.lt.s32.totalorder (!%p213_p2), %s752_s22, 1  ;;  %s883_s7 = smov (!%p213_p2), 127  }
   0x6   : > { %216 = sbr.rel (%p213_p2) target bundleno = 693 (0x2b5), region = 44  ;;  %s884_s8 = smov (!%p213_p2), 119  }
   0x7   : > { %s886_s15 = smov (!%p213_p2), 120  }
   0xb   : > { %vm279_vm0 = vcmask 97280   ;;  %v867_v0 = vld [vmem:[%s1011_s1] sm:$0xff]   ;;  %s1018_s22 = smov (!%p241_p3, %s752_s22), 1  ;;  %v869_v1 = vld [vmem:[%s1011_s1 + $0x10] sm:$0xff]   ;;  %vm286_vm1 = vcmask 1045504   ;;  %v868_v4 = vld [vmem:[%s1011_s1 + $0x8] sm:$0xff]  }
   0xc   : > { %819 = vmatprep.mubr.msk.bf16.mxu1 %vm279_vm0, %v867_v0  ;;  %s793_s27 = sshll.u32 %s1018_s22, 3  ;;  %813 = vmatprep.mubr.msk.bf16.mxu0 %vm279_vm0, %v869_v1  ;;  %v885_v5 = vmov 0   ;;  %v871_v6 = vld [vmem:[%s1011_s1 + $0x30] sm:$0xff]   ;;  %v568_v7 = vld [vmem:[%s1012_s2 + $0x18] sm:$0xff]  ;;  %v566_v8 = vld [vmem:[%s1012_s2 + $0x8] sm:$0xff]  ;;  %vm608_vm2 = vcmask 457728  }
   0xd   : > { %s245_s30 = scalar_lea.vmem %s1010_s0, %s793_s27  ;;  %864 = vset.pattern.permute.xlu1 %v885_v5  ;;  %865 = vset.pattern.permute.xlu0 %v885_v5  ;;  %v567_v9 = vld [vmem:[%s1012_s2 + $0x10] sm:$0xff]  ;;  %v565_v10 = vld [vmem:[%s1012_s2] sm:$0xff]  ;;  %v870_v15 = vld [vmem:[%s1011_s1 + $0x18] sm:$0xff]   ;;  %v887_v5 = vmov 0.0   ;;  %vm888_vm3 = vmmov 0   ;;  %vm623_vm4 = vcmask 261120  }
   0xe   : > { %v866_v2 = vld [vmem:[%s245_s30] sm:$0x3f]   ;;  %v872_v16 = vld [vmem:[%s1011_s1 + $0x38] sm:$0xff]   ;;  %v874_v20 = vld [vmem:[%s1011_s1 + $0x28] sm:$0xff]   ;;  %s759_s12 = sshll.u32 %s1018_s22, 2  ;;  %vm697_vm5 = vcmask 2048  }
   0xf   : > { %277 = vrot.lane.b32.xlu0 %v866_v2, %s883_s7  ;;  %501 = vrot.lane.b32.xlu1 %v866_v2, %s884_s8  ;;  %v356_v3 = vsel %vm286_vm1, %v866_v2, 0  ;;  %v873_v17 = vld [vmem:[%s1011_s1 + $0x20] sm:$0xff]   ;;  %s249_s17 = scalar_lea.vmem %s1016_s6, %s759_s12 }
  0x10   : > { %847 = vmatprep.subr.msk.bf16.mxu1 %vm286_vm1, %v866_v2  ;;  %v789_v48 = vld [vmem:[%s1013_s3] ss:$0 sm:$0xff] }
  0x11   : > { %818 = vmatpush3.bf16.msra.mxu1 %v356_v3 }
  0x13   : > { %422 = vrot.lane.b32.xlu0 %v866_v2, %s886_s15  ;;  %586 = vperm.xlu1 %864, %v568_v7  }
  0x14   : > { %820 = vmatmul.mubr.msk.bf16.vlgmr.msra.gmra.mxu1 %vm279_vm0, %v868_v4 }
  0x15   : > { %831 = vmatprep.mubr.msk.bf16.mxu1 %vm279_vm0, %v871_v6 }
  0x17   : > { %576 = vperm.xlu1 %864, %v566_v8   ;;  %581 = vperm.xlu0 %865, %v567_v9  }
  0x1b   : > { %571 = vperm.xlu1 %864, %v565_v10   ;;  %v621_v10 = vld [vmem:[%s1014_s4] sm:$0x7] }
  0x81   : > { %v278_v11 = vpop.permute.xlu0 %277  ;;  %v502_v12 = vpop.permute.xlu1 %501 }
  0x82   : > { %846 = vmatprep.subr.msk.bf16.mxu0 %vm286_vm1, %v278_v11  ;;  %v288_v13 = vsel %vm286_vm1, %v278_v11, 0  ;;  %v510_v14 = vsel %vm286_vm1, %v502_v12, 0  ;;  %849 = vmatprep.subr.msk.bf16.mxu1 %vm286_vm1, %v502_v12  ;;  %v622_v12 = vld [vmem:[%s1015_s5] sm:$0x7] }
  0x83   : > { %812 = vmatpush3.bf16.msra.mxu0 %v288_v13  ;;  %830 = vmatpush3.bf16.msra.mxu1 %v510_v14 }
  0x85   : > { %v423_v18 = vpop.permute.xlu0 %422 }
  0x86   : > { %v431_v19 = vsel %vm286_vm1, %v423_v18, 0  ;;  %814 = vmatmul.mubr.msk.bf16.vlgmr.msra.gmra.mxu0 %vm279_vm0, %v870_v15  ;;  %848 = vmatprep.subr.msk.bf16.mxu0 %vm286_vm1, %v423_v18 }
  0x87   : > { %824 = vmatpush3.bf16.msra.mxu0 %v431_v19  ;;  %832 = vmatmul.mubr.msk.bf16.vlgmr.msra.gmra.mxu1 %vm279_vm0, %v872_v16 }
  0x88   : > { %825 = vmatprep.mubr.msk.bf16.mxu0 %vm279_vm0, %v873_v17  ;;  %835 = vmatprep.subr.mxu0 %v887_v5 }
  0x8e   : > { %826 = vmatmul.mubr.msk.bf16.vlgmr.msra.gmra.mxu0 %vm279_vm0, %v874_v20  ;;  %v587_v27 = vpop.permute.xlu1 %586 }
  0x8f   : > { %843 = vmatprep.mubr.msk.f32.mxu0 %vm888_vm3, %v887_v5 }
  0x92   : > { %v577_v36 = vpop.permute.xlu1 %576  ;;  %v582_v38 = vpop.permute.xlu0 %581 }
  0x96   : > { %v572_v54 = vpop.permute.xlu1 %571 }
  0xd4   : > { %v821_v21 = vpop.f32.mrf.mxu1 }
  0xd6   : > { %v392_v22 = vpop.f32.mrf.mxu1 }
  0xd8   : > { %v822_v23 = vpop.f32.mrf.mxu1 }
  0xda   : > { %v395_v25 = vpop.f32.mrf.mxu1 }
 0x146   : > { %v815_v24 = vpop.f32.mrf.mxu0 }
 0x147   : > { %v833_v29 = vpop.f32.mrf.mxu1  ;;  %v401_v31 = vadd.f32 %v821_v21, %v815_v24 }
 0x148   : > { %v324_v26 = vpop.f32.mrf.mxu0 }
 0x149   : > { %v546_v32 = vpop.f32.mrf.mxu1  ;;  %v393_v34 = vadd.f32 %v392_v22, %v324_v26 }
 0x14a   : > { %v816_v28 = vpop.f32.mrf.mxu0 }
 0x14b   : > { %v404_v39 = vadd.f32 %v822_v23, %v816_v28  ;;  %v834_v42 = vpop.f32.mrf.mxu1 }
 0x14c   : > { %v327_v30 = vpop.f32.mrf.mxu0 }
 0x14d   : > { %v396_v44 = vadd.f32 %v395_v25, %v327_v30  ;;  %v549_v53 = vpop.f32.mrf.mxu1 }
 0x14e   : > { %v827_v33 = vpop.f32.mrf.mxu0 }
 0x14f   : > { %v484_v35 = vadd.f32 %v827_v33, %v401_v31 }
 0x150   : > { %v467_v37 = vpop.f32.mrf.mxu0 }
 0x151   : > { %v482_v40 = vadd.f32 %v467_v37, %v393_v34  ;;  %v563_v41 = vadd.f32 %v833_v29, %v484_v35 }
 0x152   : > { %v828_v43 = vpop.f32.mrf.mxu0 }
 0x153   : > { %v485_v45 = vadd.f32 %v828_v43, %v404_v39  ;;  %v591_v46 = vadd.f32 %v582_v38, %v563_v41  ;;  %v561_v51 = vadd.f32 %v546_v32, %v482_v40 }
 0x154   : > { %v470_v47 = vpop.f32.mrf.mxu0 }
 0x155   : > { %v564_v49 = vadd.f32 %v834_v42, %v485_v45  ;;  %v595_v50 = vmax.f32 %v591_v46, 0.0  ;;  %v483_v52 = vadd.f32 %v470_v47, %v396_v44  ;;  %v589_v58 = vadd.f32 %v572_v54, %v561_v51 }
 0x157   : > { %v592_v55 = vadd.f32 %v587_v27, %v564_v49  ;;  %v562_v56 = vadd.f32 %v549_v53, %v483_v52  ;;  %v606_v57 = vmul.f32 %v789_v48, %v595_v50  ;;  %v593_v0 = vmax.f32 %v589_v58, 0.0 }
 0x159   : > { %v590_v59 = vadd.f32 %v577_v36, %v562_v56  ;;  %v615_v60 = vsel %vm608_vm2, %v606_v57, 0.0  ;;  %v596_v61 = vmax.f32 %v592_v55, 0.0  ;;  %v604_v4 = vmul.f32 %v789_v48, %v593_v0 }
 0x15a   : > { %616 = vadd.xlane.f32.xlu1 %v615_v60 }
 0x15b   : > { %v607_v62 = vmul.f32 %v789_v48, %v596_v61  ;;  %v594_v63 = vmax.f32 %v590_v59, 0.0  ;;  %v609_v6 = vsel %vm608_vm2, %v604_v4, 0.0 }
 0x15d   : > { %v618_v1 = vsel %vm608_vm2, %v607_v62, 0.0  ;;  %v605_v2 = vmul.f32 %v789_v48, %v594_v63 }
 0x15e   : > { %619 = vadd.xlane.f32.xlu0 %v618_v1 }
 0x15f   : > { %v612_v3 = vsel %vm608_vm2, %v605_v2, 0.0 }
 0x162   : > { %613 = vadd.xlane.f32.xlu0 %v612_v3 }
 0x166   : > { %610 = vadd.xlane.f32.xlu0 %v609_v6 }
 0x1e3   : > { %v617_v8 = vpop.xlane.xlu1 %616 }
 0x1e7   : > { %v620_v7 = vpop.xlane.xlu0 %619 }
 0x1e8   : > { %836 = vmatpush3.msra.mxu0 %v620_v7 }
 0x1e9   : > { %837 = vmatprep.subr.mxu0 %v887_v5 }
 0x1ea   : > { %838 = vmatpush3.msra.mxu0 %v617_v8 }
 0x1eb   : > { %839 = vmatprep.subr.mxu0 %v887_v5  ;;  %v614_v9 = vpop.xlane.xlu0 %613 }
 0x1ec   : > { %840 = vmatpush3.msra.mxu0 %v614_v9 }
 0x1ed   : > { %841 = vmatprep.subr.mxu0 %v887_v5 }
 0x1ef   : > { %v611_v11 = vpop.xlane.xlu0 %610 }
 0x1f0   : > { %842 = vmatpush3.msra.mxu0 %v611_v11 }
 0x1f1   : > { %844 = vmatmul.mubr.msk.f32.vlgmr.msra.gmra.mxu0 %vm623_vm4, %v621_v10 }
 0x2b1   : > { %v693_v13 = vpop.f32.mrf.mxu0 }
 0x2b2   : > { %v694_v14 = vadd.f32 %v693_v13, %v622_v12 }
 0x2b3   : > { %v845_v15 = vpop.f32.mrf.mxu0 }
 0x2b4   : > { %698 = vst.msk [vmem:[%s249_s17] sm:$0x7] %vm697_vm5, %v694_v14 }
 0x2b5 PF: > { %s16_s21 = sadd.s32 1, %s881_s21  }
 0x2b6   : > { %p13_p4 = scmp.ge.s32.totalorder %s16_s21, 4  }
 0x2b8   :  { %15 = sbr.rel (!%p13_p4) target bundleno = 1 (0x1), region = 77 }

</bundles_post_ra>
